<compile_context>
chip_gen: v5e
topology: v5e:2x2
jax: 0.10.0
libtpu: 0.0.40
codegen_flags: <defaults>
</compile_context>

<pallas_src>
import jax
import jax.numpy as jnp
from jax import lax
from jax.experimental import pallas as pl
from jax.experimental.pallas import tpu as pltpu


# ----------------------------------------------------------------------------
# Pallas kernel: 1x1 conv (BN folded) + SiLU, channels-on-sublanes / pixels-on-
# lanes so the output lands directly in NCHW layout.
# ----------------------------------------------------------------------------
def _focus_conv_kernel(x_ref, w_ref, b_ref, o_ref):
    """x: (4C, TP) pixel block of the space-to-depth input
       w: (Cout, 4C) BN-folded conv weight
       b: (Cout, 1)  BN-folded bias
       o: (Cout, TP) output pixel block (NCHW row-major view)
    """
    acc = jnp.dot(w_ref[...], x_ref[...], preferred_element_type=jnp.float32)
    y = acc + b_ref[...]
    y = y * jax.nn.sigmoid(y)                       # SiLU
    o_ref[...] = y.astype(o_ref.dtype)


# ----------------------------------------------------------------------------
# Tiling helpers (dtype-, padding- and generation-aware)
# ----------------------------------------------------------------------------
def _cdiv(a, b):
    return -(-a // b)


def _round_up(v, m):
    return _cdiv(v, m) * m


def _sublane_unit(itemsize):
    # f32 -> 8 sublanes, bf16 -> 16, int8/fp8 -> 32 (sub-32-bit packs sublanes)
    return 8 * max(1, 4 // itemsize)


def _vmem_limits():
    """(scoped vmem limit, per-block double-buffered budget) for this chip."""
    try:
        cap = int(pltpu.get_tpu_info().vmem_capacity_bytes)
    except Exception:
        cap = 128 * 1024 * 1024
    limit = min(cap * 3 // 4, 96 * 1024 * 1024)      # 96 MiB v5e/v6e, 48 MiB v7x
    budget = min(16 * 1024 * 1024, limit // 6)       # 16 MiB v5e/v6e,  8 MiB v7x
    return limit, budget


def _pick_pixel_tile(P, k_pad, cout_pad, itemsize, n_batch, budget):
    """Pixel-tile size TP: biggest 128-multiple (or full P) fitting the budget,
    with >=2 grid steps when possible so v7x's two TensorCores both run."""
    per_col = (k_pad + cout_pad) * itemsize * 2      # double-buffered in + out
    tp = max(128, budget // per_col)
    if tp >= P:
        tp = P
    else:
        tp = max(128, (tp // 128) * 128)
    if n_batch == 1 and tp == P and P > 128:
        tp = max(128, _round_up(_cdiv(P, 2), 128))   # split across 2 TCs
    return int(tp)


# ----------------------------------------------------------------------------
# Forward wrapper (matches the nn.Module NCHW semantics, no output transpose)
# ----------------------------------------------------------------------------
@jax.jit
def focus_forward(x_nchw, params):
    w, b = params["w"], params["b"]                  # (Cout, 4C), (Cout,)
    N, C, H, W = x_nchw.shape
    assert H % 2 == 0 and W % 2 == 0, "Focus requires even spatial dims"
    H2, W2 = H // 2, W // 2
    Cout, C4 = w.shape
    assert C4 == 4 * C
    P = H2 * W2
    dt = x_nchw.dtype
    itemsize = jnp.dtype(dt).itemsize

    # Space-to-depth: torch.cat([x[...,::2,::2], x[...,1::2,::2],
    #                            x[...,::2,1::2], x[...,1::2,1::2]], 1)
    # realized as one layout op on the small input tensor.  Channel order is
    # (wp, hp, c) == torch's cat order; pixel axis is h2*W2 + w2 (NCHW order).
    x6 = x_nchw.reshape(N, C, H2, 2, W2, 2)                  # free view
    xcat = jnp.transpose(x6, (0, 5, 3, 1, 2, 4)).reshape(N, C4, P)

    sub = _sublane_unit(itemsize)
    vmem_limit, budget = _vmem_limits()
    tp = _pick_pixel_tile(P, _round_up(C4, sub), _round_up(Cout, sub),
                          itemsize, N, budget)
    nblk = _cdiv(P, tp)                                      # ragged tail is masked

    out = pl.pallas_call(
        _focus_conv_kernel,
        out_shape=jax.ShapeDtypeStruct((N, Cout, P), dt),
        grid=(N, nblk),
        in_specs=[
            pl.BlockSpec((None, C4, tp), lambda n, i: (n, 0, i)),
            pl.BlockSpec((Cout, C4), lambda n, i: (0, 0)),
            pl.BlockSpec((Cout, 1), lambda n, i: (0, 0)),
        ],
        out_specs=pl.BlockSpec((None, Cout, tp), lambda n, i: (n, 0, i)),
        compiler_params=pltpu.CompilerParams(
            dimension_semantics=("parallel", "parallel"),
            vmem_limit_bytes=vmem_limit),
    )(xcat, w, b.reshape(Cout, 1))

    # Free row-major view back to the NCHW output shape (no transpose).
    return out.reshape(N, Cout, H2, W2)


# ----------------------------------------------------------------------------
# Parameters (deterministic; eval-mode BN folded into conv weight/bias)
# ----------------------------------------------------------------------------
def init_focus_params(key, c1, c2, eps=1e-5):
    c4 = 4 * c1
    kw, kg, kb, km, kv = jax.random.split(key, 5)
    conv_w = 0.1 * jax.random.normal(kw, (c2, c4), jnp.float32)  # torch w[:, :, 0, 0]
    gamma = 1.0 + 0.1 * jax.random.normal(kg, (c2,), jnp.float32)
    beta = 0.1 * jax.random.normal(kb, (c2,), jnp.float32)
    mean = 0.1 * jax.random.normal(km, (c2,), jnp.float32)
    var = jnp.abs(jax.random.normal(kv, (c2,), jnp.float32)) + 0.5
    scale = gamma / jnp.sqrt(var + eps)
    return {"w": conv_w * scale[:, None], "b": beta - mean * scale}


# ----------------------------------------------------------------------------
# Pure-JAX reference (mirrors the PyTorch Focus forward exactly)
# ----------------------------------------------------------------------------
def focus_reference(x_nchw, params):
    w, b = params["w"], params["b"]
    x = x_nchw
    xcat = jnp.concatenate(
        [x[:, :, ::2, ::2], x[:, :, 1::2, ::2],
         x[:, :, ::2, 1::2], x[:, :, 1::2, 1::2]], axis=1)       # (N,4C,H2,W2)
    y = jnp.einsum('nchw,dc->ndhw', xcat, w, precision=lax.Precision.HIGHEST)
    y = y + b[None, :, None, None]
    return y * jax.nn.sigmoid(y)


# ----------------------------------------------------------------------------
if __name__ == "__main__":
    key = jax.random.PRNGKey(0)
    kx, kp, kx2, kp2 = jax.random.split(key, 4)

    # Focus(c1=4, c2=32) on a small NCHW input.
    c1, c2 = 4, 32
    x = jax.random.normal(kx, (2, c1, 16, 16), jnp.float32)
    params = init_focus_params(kp, c1, c2)

    out = jax.block_until_ready(focus_forward(x, params))
    ref = focus_reference(x, params)
    assert out.shape == (2, c2, 8, 8) and out.dtype == jnp.float32
    # Default MXU matmul precision in-kernel vs HIGHEST-precision reference.
    assert jnp.allclose(out, ref, atol=2e-3, rtol=2e-3), "mismatch vs JAX reference"

    # Second config exercises the multi-block pixel tiling (N=1 split across
    # >=2 grid steps, YOLO-like 3 input channels).
    c1b, c2b = 3, 16
    x2 = jax.random.normal(kx2, (1, c1b, 64, 64), jnp.float32)
    params2 = init_focus_params(kp2, c1b, c2b)
    out2 = jax.block_until_ready(focus_forward(x2, params2))
    ref2 = focus_reference(x2, params2)
    assert out2.shape == (1, c2b, 32, 32)
    assert jnp.allclose(out2, ref2, atol=2e-3, rtol=2e-3), "mismatch vs JAX reference"

    print("KERNEL_OK")
</pallas_src>

<mosaic_0001>
module attributes {stable_mosaic.version = 11 : i64} {
  func.func @_focus_conv_kernel(%arg0: i32, %arg1: i32, %arg2: memref<1x16x64xf32, #tpu.memory_space<vmem>>, %arg3: memref<32x16xf32, #tpu.memory_space<vmem>>, %arg4: memref<32x1xf32, #tpu.memory_space<vmem>>, %arg5: memref<1x32x64xf32, #tpu.memory_space<vmem>>) attributes {dimension_semantics = [#tpu.dimension_semantics<parallel>, #tpu.dimension_semantics<parallel>], iteration_bounds = array<i64: 2, 1>, scalar_prefetch = 0 : i64, scratch_operands = 0 : i64, tpu.core_type = #tpu.core_type<tc>, window_params = [{transform_indices = @transform_0, window_bounds = array<i64: 1, 16, 64>}, {pipeline_mode = #tpu.pipeline_mode<synchronous>, transform_indices = @transform_1, window_bounds = array<i64: 32, 16>}, {pipeline_mode = #tpu.pipeline_mode<synchronous>, transform_indices = @transform_2, window_bounds = array<i64: 32, 1>}, {transform_indices = @transform_3, window_bounds = array<i64: 1, 32, 64>}]} {
    %c0 = arith.constant 0 : index
    %c0_0 = arith.constant 0 : index
    %0 = vector.load %arg3[%c0, %c0_0] : memref<32x16xf32, #tpu.memory_space<vmem>>, vector<32x16xf32>
    %c0_1 = arith.constant 0 : index
    %c0_2 = arith.constant 0 : index
    %c0_3 = arith.constant 0 : index
    %1 = vector.load %arg2[%c0_1, %c0_2, %c0_3] : memref<1x16x64xf32, #tpu.memory_space<vmem>>, vector<1x16x64xf32>
    %2 = vector.shape_cast %1 : vector<1x16x64xf32> to vector<16x64xf32>
    %cst = arith.constant dense<0.000000e+00> : vector<32x64xf32>
    %3 = tpu.matmul %0, %2, %cst {dimension_numbers = #tpu.dot_dimension_numbers<[1], [0], [0], [1], [0, 0, 1, 1], [], []>} : vector<32x16xf32>, vector<16x64xf32>, vector<32x64xf32> -> vector<32x64xf32>
    %c0_4 = arith.constant 0 : index
    %c0_5 = arith.constant 0 : index
    %4 = vector.load %arg4[%c0_4, %c0_5] : memref<32x1xf32, #tpu.memory_space<vmem>>, vector<32x1xf32>
    %5 = vector.broadcast %4 : vector<32x1xf32> to vector<32x64xf32>
    %6 = arith.addf %3, %5 : vector<32x64xf32>
    %7 = arith.negf %6 : vector<32x64xf32>
    %8 = math.exp %7 : vector<32x64xf32>
    %cst_6 = arith.constant 1.000000e+00 : f32
    %9 = vector.broadcast %cst_6 : f32 to vector<32x64xf32>
    %10 = arith.addf %9, %8 : vector<32x64xf32>
    %11 = arith.divf %9, %10 : vector<32x64xf32>
    %12 = arith.mulf %6, %11 : vector<32x64xf32>
    %c0_7 = arith.constant 0 : index
    %c0_8 = arith.constant 0 : index
    %c0_9 = arith.constant 0 : index
    %13 = vector.load %arg5[%c0_7, %c0_8, %c0_9] : memref<1x32x64xf32, #tpu.memory_space<vmem>>, vector<1x32x64xf32>
    %14 = vector.shape_cast %13 : vector<1x32x64xf32> to vector<32x64xf32>
    %15 = vector.shape_cast %12 : vector<32x64xf32> to vector<1x32x64xf32>
    tpu.vector_store %arg5[%c0_7, %c0_8, %c0_9], %15 {strides = array<i32>} : memref<1x32x64xf32, #tpu.memory_space<vmem>>, vector<1x32x64xf32>,
    return
  }
  func.func @transform_0(%arg0: i32, %arg1: i32) -> (i32, i32, i32) {
    %c0_i32 = arith.constant 0 : i32
    %c0_i32_0 = arith.constant 0 : i32
    return %arg0, %c0_i32, %arg1 : i32, i32, i32
  }
  func.func @transform_1(%arg0: i32, %arg1: i32) -> (i32, i32) {
    %c0_i32 = arith.constant 0 : i32
    %c0_i32_0 = arith.constant 0 : i32
    %c0_i32_1 = arith.constant 0 : i32
    return %c0_i32, %c0_i32_0 : i32, i32
  }
  func.func @transform_2(%arg0: i32, %arg1: i32) -> (i32, i32) {
    %c0_i32 = arith.constant 0 : i32
    %c0_i32_0 = arith.constant 0 : i32
    %c0_i32_1 = arith.constant 0 : i32
    return %c0_i32, %c0_i32_0 : i32, i32
  }
  func.func @transform_3(%arg0: i32, %arg1: i32) -> (i32, i32, i32) {
    %c0_i32 = arith.constant 0 : i32
    %c0_i32_0 = arith.constant 0 : i32
    return %arg0, %c0_i32, %arg1 : i32, i32, i32
  }
}

</mosaic_0001>

<bundles_post_ra>
// kernel: focus_forward.1
= control target key start
LH: loop header
LB: loop body
LE: loop exit
PB: predicated region body
PF: predicated region fallthrough
CT: control target
= control target key end

     0   :  { %s557_s12 = smov 0   ;;  %s559_s13 = smov 0   ;;  %s647_s0 = inlined_call_operand.vmem [shape: f32[2,16,64], index: 0, kind: input, shape index: {}]   ;;  %s648_s1 = inlined_call_operand.vmem [shape: f32[32,16], index: 1, kind: input, shape index: {}]   ;;  %s649_s2 = inlined_call_operand.vmem [shape: f32[32,1], index: 2, kind: input, shape index: {}]   ;;  %s650_s3 = inlined_call_operand.vmem [shape: f32[2,32,64], index: 3, kind: output, shape index: {}]  }
   0x1   :  { %s561_s14 = smov 0  }
   0x2 LB: > { %s25_s15 = sadd.s32 1, %s530_s13  ;;  %p446_p0 = scmp.ge.s32.totalorder %s534_s14, 1  ;;  %s534_s14 = sphi %s561_s14, %s13_s14   ;;  %s530_s13 = sphi %s559_s13, %s652_s13   ;;  %s526_s12 = sphi %s557_s12, %s651_s12  }
   0x3   : > { %p27_p1 = scmp.ge.s32.totalorder %s25_s15, 2  ;;  %p156_p2 = scmp.lt.s32.totalorder %s534_s14, 3 }
   0x5   : > { %s654_s15 = smov (%p27_p1, %s25_s15), 0  ;;  %p157_p3 = pnand %p446_p0, %p156_p2 }
   0x6   : > { %p186_p4 = scmp.lt.s32.totalorder (!%p157_p3), %s526_s12, 1 }
   0x7   : > { %160 = sbr.rel (%p157_p3) target bundleno = 187 (0xbb), region = 32 }
   0xc   : > { %v536_v0 = vmov 0   ;;  %v210_v1 = vld [vmem:[%s649_s2 + $0x10] sm:$0xff]  ;;  %v208_v2 = vld [vmem:[%s649_s2] sm:$0xff]  ;;  %s656_s12 = smov (!%p186_p4, %s526_s12), 1  ;;  %vm232_vm0 = vcmask 130048   ;;  %v203_v6 = vld [vmem:[%s648_s1 + $0x8] sm:$0xff] }
   0xd   : > { %495 = vset.pattern.permute.xlu1 %v536_v0  ;;  %494 = vset.pattern.permute.xlu0 %v536_v0  ;;  %s461_s20 = sshll.u32 %s656_s12, 4  ;;  %v202_v5 = vld [vmem:[%s648_s1] sm:$0xff]  ;;  %v204_v7 = vld [vmem:[%s648_s1 + $0x10] sm:$0xff]  ;;  %v205_v8 = vld [vmem:[%s648_s1 + $0x18] sm:$0xff]  ;;  %s462_s9 = sshll.u32 %s656_s12, 5  ;;  %vm354_vm4 = vcmask 523264  }
   0xe   : > { %224 = vperm.xlu1 %495, %v210_v1   ;;  %214 = vperm.xlu0 %494, %v208_v2   ;;  %s193_s23 = scalar_lea.vmem %s647_s0, %s461_s20  ;;  %v211_v9 = vld [vmem:[%s649_s2 + $0x18] sm:$0xff]  ;;  %v209_v10 = vld [vmem:[%s649_s2 + $0x8] sm:$0xff]  ;;  %s621_s16 = scalar_lea.vmem %s650_s3, %s462_s9 }
   0xf   : > { %v207_v3 = vld [vmem:[%s193_s23 + $0x8] sm:$0xff]  ;;  %v206_v4 = vld [vmem:[%s193_s23] sm:$0xff] }
  0x10   : > { %259 = vmatpush.msra.mxu0 %v207_v3  ;;  %463 = vmatpush.msra.mxu1 %v207_v3 }
  0x11   : > { %464 = vmatpush.msra.mxu2 %v207_v3  ;;  %465 = vmatpush.msra.mxu3 %v207_v3 }
  0x12   : > { %260 = vmatpush.msra.mxu0 %v206_v4  ;;  %466 = vmatpush.msra.mxu1 %v206_v4 }
  0x13   : > { %467 = vmatpush.msra.mxu2 %v206_v4  ;;  %468 = vmatpush.msra.mxu3 %v206_v4 }
  0x14   : > { %451 = vmatmul.msk.f32.vlgmr.msra.gmra.mxu0 %vm232_vm0, %v202_v5  ;;  %452 = vmatmul.msk.f32.vlgmr.msra.gmra.mxu1 %vm232_vm0, %v203_v6 }
  0x15   : > { %453 = vmatmul.msk.f32.vlgmr.msra.gmra.mxu2 %vm232_vm0, %v204_v7  ;;  %454 = vmatmul.msk.f32.vlgmr.msra.gmra.mxu3 %vm232_vm0, %v205_v8 }
  0x16   : > { %229 = vperm.xlu1 %495, %v211_v9   ;;  %219 = vperm.xlu0 %494, %v209_v10  }
  0x80   : > { %v215_v11 = vpop.permute.xlu0 %214  ;;  %v225_v12 = vpop.permute.xlu1 %224 }
  0x88   : > { %v220_v13 = vpop.permute.xlu0 %219  ;;  %v230_v20 = vpop.permute.xlu1 %229 }
  0x91   : > { %v262_v14 = vpop.f32.mrf.mxu0  ;;  %v265_v15 = vpop.f32.mrf.mxu1 }
  0x92   : > { %v263_v16 = vadd.f32 %v262_v14, %v215_v11  ;;  %v605_v17 = vadd.f32 %v265_v15, %v220_v13 }
  0x94   : > { %v455_v18 = vmul.f32 -1.442695, %v263_v16  ;;  %v456_v19 = vmul.f32 -1.442695, %v605_v17 }
  0x96   : > { %496 = vpow2.f32 %v455_v18 }
  0x97   : > { %498 = vpow2.f32 %v456_v19 }
  0x98   : > { %v268_v21 = vpop.f32.mrf.mxu2  ;;  %v271_v22 = vpop.f32.mrf.mxu3 }
  0x99   : > { %v608_v23 = vadd.f32 %v268_v21, %v225_v12  ;;  %v610_v24 = vadd.f32 %v271_v22, %v230_v20 }
  0x9b   : > { %v457_v25 = vmul.f32 -1.442695, %v608_v23  ;;  %v458_v26 = vmul.f32 -1.442695, %v610_v24 }
  0x9c   : > { %v497_v27 = vpop.eup %496 }
  0x9d   : > { %v499_v28 = vpop.eup %498  ;;  %v286_v29 = vadd.f32 1.0, %v497_v27  ;;  %500 = vpow2.f32 %v457_v25 }
  0x9e   : > { %v287_v30 = vadd.f32 1.0, %v499_v28  ;;  %502 = vpow2.f32 %v458_v26 }
  0x9f   : > { %504 = vrcp.f32 %v286_v29  ;;  %v299_v40 = vand.u32 2147483647, %v286_v29  ;;  %v301_v41 = vand.u32 2147483648, %v286_v29  ;;  %vm295_vm3 = vweird.f32 %v286_v29 }
  0xa0   : > { %506 = vrcp.f32 %v287_v30  ;;  %v314_v44 = vand.u32 2147483647, %v287_v30  ;;  %v316_v45 = vand.u32 2147483648, %v287_v30  ;;  %vm310_vm6 = vweird.f32 %v287_v30 }
  0xa1   : > { %v302_v49 = vor.u32 1.1754944e-38, %v301_v41  ;;  %vm300_vm7 = vcmp.eq.f32.partialorder %v299_v40, 8.507059e+37 }
  0xa2   : > { %vm315_vm9 = vcmp.eq.f32.partialorder %v314_v44, 8.507059e+37  ;;  %v317_v54 = vor.u32 1.1754944e-38, %v316_v45 }
  0xa3   : > { %v501_v31 = vpop.eup %500 }
  0xa4   : > { %v503_v32 = vpop.eup %502  ;;  %v288_v33 = vadd.f32 1.0, %v501_v31 }
  0xa5   : > { %v505_v34 = vpop.eup %504  ;;  %v614_v35 = vadd.f32 1.0, %v503_v32 }
  0xa6   : > { %v507_v36 = vpop.eup %506  ;;  %v291_v37 = vmul.f32 %v505_v34, %v286_v29  ;;  %508 = vrcp.f32 %v288_v33  ;;  %vm296_vm1 = vweird.f32 %v505_v34  ;;  %v329_v61 = vand.u32 2147483647, %v288_v33 }
  0xa7   : > { %v306_v38 = vmul.f32 %v507_v36, %v287_v30  ;;  %510 = vrcp.f32 %v614_v35  ;;  %vm311_vm2 = vweird.f32 %v507_v36  ;;  %vm297_vm5 = vmor %vm295_vm3, %vm296_vm1  ;;  %v331_v62 = vand.u32 2147483648, %v288_v33 }
  0xa8   : > { %v292_v39 = vsub.f32 1.0, %v291_v37  ;;  %vm312_vm8 = vmor %vm310_vm6, %vm311_vm2  ;;  %vm325_vm11 = vweird.f32 %v288_v33  ;;  %v346_v2 = vand.u32 2147483648, %v614_v35  ;;  %v344_v5 = vand.u32 2147483647, %v614_v35 }
  0xa9   : > { %v307_v42 = vsub.f32 1.0, %v306_v38  ;;  %v332_v6 = vor.u32 1.1754944e-38, %v331_v62  ;;  %vm330_vm14 = vcmp.eq.f32.partialorder %v329_v61, 8.507059e+37  ;;  %vm340_vm15 = vweird.f32 %v614_v35 }
  0xaa   : > { %v293_v43 = vmul.f32 %v505_v34, %v292_v39  ;;  %v347_v10 = vor.u32 1.1754944e-38, %v346_v2  ;;  %vm345_vm1 = vcmp.eq.f32.partialorder %v344_v5, 8.507059e+37 }
  0xab   : > { %v308_v46 = vmul.f32 %v507_v36, %v307_v42 }
  0xac   : > { %v509_v47 = vpop.eup %508  ;;  %v294_v48 = vadd.f32 %v505_v34, %v293_v43 }
  0xad   : > { %v309_v50 = vadd.f32 %v507_v36, %v308_v46  ;;  %v321_v51 = vmul.f32 %v509_v47, %v288_v33  ;;  %v511_v52 = vpop.eup %510  ;;  %vm326_vm10 = vweird.f32 %v509_v47 }
  0xae   : > { %v298_v53 = vsel %vm297_vm5, %v505_v34, %v294_v48  ;;  %v336_v58 = vmul.f32 %v511_v52, %v614_v35  ;;  %vm341_vm12 = vweird.f32 %v511_v52  ;;  %vm327_vm13 = vmor %vm325_vm11, %vm326_vm10 }
  0xaf   : > { %v303_v55 = vsel %vm300_vm7, %v302_v49, %v298_v53  ;;  %v313_v56 = vsel %vm312_vm8, %v507_v36, %v309_v50  ;;  %v322_v57 = vsub.f32 1.0, %v321_v51  ;;  %vm342_vm0 = vmor %vm340_vm15, %vm341_vm12 }
  0xb0   : > { %v350_v59 = vmul.f32 %v303_v55, %v263_v16  ;;  %v318_v60 = vsel %vm315_vm9, %v317_v54, %v313_v56  ;;  %v337_v1 = vsub.f32 1.0, %v336_v58 }
  0xb1   : > { %v351_v63 = vmul.f32 %v318_v60, %v605_v17  ;;  %v323_v0 = vmul.f32 %v509_v47, %v322_v57 }
  0xb2   : > { %355 = vst.msk [vmem:[%s621_s16] sm:$0xff] %vm354_vm4, %v350_v59  ;;  %v338_v4 = vmul.f32 %v511_v52, %v337_v1 }
  0xb3   : > { %356 = vst.msk [vmem:[%s621_s16 + $0x8] sm:$0xff] %vm354_vm4, %v351_v63  ;;  %v324_v3 = vadd.f32 %v509_v47, %v323_v0 }
  0xb4   : > { %v339_v8 = vadd.f32 %v511_v52, %v338_v4 }
  0xb5   : > { %v328_v7 = vsel %vm327_vm13, %v509_v47, %v324_v3 }
  0xb6   : > { %v333_v9 = vsel %vm330_vm14, %v332_v6, %v328_v7  ;;  %v343_v12 = vsel %vm342_vm0, %v511_v52, %v339_v8 }
  0xb7   : > { %v352_v11 = vmul.f32 %v333_v9, %v608_v23  ;;  %v348_v13 = vsel %vm345_vm1, %v347_v10, %v343_v12 }
  0xb8   : > { %v353_v14 = vmul.f32 %v348_v13, %v610_v24 }
  0xb9   : > { %357 = vst.msk [vmem:[%s621_s16 + $0x10] sm:$0xff] %vm354_vm4, %v352_v11 }
  0xba   : > { %358 = vst.msk [vmem:[%s621_s16 + $0x18] sm:$0xff] %vm354_vm4, %v353_v14 }
  0xbb PF: > { %s13_s14 = sadd.s32 1, %s534_s14   ;;  %s651_s12 = smov %s530_s13 }
  0xbc   : > { %p10_p5 = scmp.ge.s32.totalorder %s13_s14, 4   ;;  %s652_s13 = smov %s654_s15 }
  0xbe   :  { %12 = sbr.rel (!%p10_p5) target bundleno = 2 (0x2), region = 62 }

</bundles_post_ra>
